<compile_context>
chip_gen: v7x
topology: tpu7x:2x2x1
jax: 0.10.0
libtpu: 0.0.40
codegen_flags: <defaults>
</compile_context>

<pallas_src>
import jax
import jax.numpy as jnp
import numpy as np
from jax.experimental import pallas as pl
from jax.experimental.pallas import tpu as pltpu

# ---- dimensions implied by the synthetic structure_config ----
D1, D2, D3 = 8, 4, 6            # input_split_schema [8, 4, 6]
D_IN = D1 + D2 + D3             # 18
H1 = 16                         # discrete xform 'cat_a': Linear(8->16) + ReLU
H3 = 8                          # real xform:            Linear(6->8)  + Tanh
CONCAT = H1 + D2 + H3           # 28
FC1 = 32                        # encoder_FCN_to_latent dims [32]
LATENT = 16                     # ae_latent_dimension
DEC1 = 32                       # decoder_FC_from_latent dims [32]
D_OUT = D1 + D2 + D3            # decoder total_op_dim = 18

G = 8                           # samples packed per lane row (G * LATENT = 128 lanes)
BMG_MAX = 2048                  # max packed rows per grid step (= 16384 samples)

# packed-bias layout: every segment starts on a 128-lane boundary
B1_OFF, B2_OFF, B3_OFF, B4_OFF, B5_OFF = 0, 256, 512, 640, 896
B_TOTAL = 1152                  # 9 lane tiles


def ae_kernel(x_ref, w1_ref, w2_ref, w3_ref, w4_ref, w5_ref, b_ref,
              z_ref, xr_ref):
    # x_ref: (BMG, G*D_IN) f32.  MXU operands are bf16; accumulation is f32.
    x = x_ref[...].astype(jnp.bfloat16)

    b1 = b_ref[:, B1_OFF:B1_OFF + G * CONCAT]
    b2 = b_ref[:, B2_OFF:B2_OFF + G * FC1]
    b3 = b_ref[:, B3_OFF:B3_OFF + G * LATENT]
    b4 = b_ref[:, B4_OFF:B4_OFF + G * DEC1]
    b5 = b_ref[:, B5_OFF:B5_OFF + G * D_OUT]

    # ---- encoder stage 1: per-column input transforms ----------------------
    # torch.split + per-column {Linear+ReLU | Identity | Linear+Tanh} + torch.cat
    # fused into ONE block-diagonal matmul.  Columns are permuted host-side so
    # lanes [0:128) are ReLU, [128:160) identity, [160:224) tanh.
    a = jnp.dot(x, w1_ref[...], preferred_element_type=jnp.float32) + b1
    h_relu = jnp.maximum(a[:, :G * H1], 0.0)            # aligned 128-lane tile
    tail = a[:, G * H1:]                                 # 96 lanes (32 id + 64 tanh)
    lane = jax.lax.broadcasted_iota(jnp.int32, tail.shape, 1)
    h_tail = jnp.where(lane < G * D2, tail, jnp.tanh(tail))
    h = jnp.concatenate([h_relu, h_tail], axis=1).astype(jnp.bfloat16)

    # ---- encoder FC_z: Linear(28->32)+Dropout(eval)+Tanh, Linear(32->16)+Tanh
    g = jnp.tanh(jnp.dot(h, w2_ref[...], preferred_element_type=jnp.float32) + b2)
    z = jnp.tanh(jnp.dot(g.astype(jnp.bfloat16), w3_ref[...],
                         preferred_element_type=jnp.float32) + b3)
    z_ref[...] = z                                       # (BMG, 128) lane-dense store

    # ---- decoder FC_z: Linear(16->32)+Dropout(eval)+Tanh, Linear(32->18)+Sigmoid
    d = jnp.tanh(jnp.dot(z.astype(jnp.bfloat16), w4_ref[...],
                         preferred_element_type=jnp.float32) + b4)
    o = jnp.dot(d.astype(jnp.bfloat16), w5_ref[...],
                preferred_element_type=jnp.float32) + b5
    xr_ref[...] = 0.5 * jnp.tanh(0.5 * o) + 0.5          # sigmoid via one EUP tanh


# ---------------------------------------------------------------------------
# host-side (one-time) weight layout prep
# ---------------------------------------------------------------------------
def _block_diag(w, g=G):
    k, n = w.shape
    out = jnp.zeros((g * k, g * n), jnp.float32)
    for j in range(g):
        out = out.at[j * k:(j + 1) * k, j * n:(j + 1) * n].set(w)
    return out


def _tile_bias(b, g=G):
    return jnp.tile(jnp.reshape(b, (-1,)).astype(jnp.float32), g).reshape(1, -1)


def _stage1_perm():
    """Permutation grouping stage-1 output lanes by activation (relu|id|tanh)."""
    perm = []
    for j in range(G):                                   # ReLU lanes -> [0:128)
        perm += list(range(j * CONCAT, j * CONCAT + H1))
    for j in range(G):                                   # identity lanes -> [128:160)
        perm += list(range(j * CONCAT + H1, j * CONCAT + H1 + D2))
    for j in range(G):                                   # tanh lanes -> [160:224)
        perm += list(range(j * CONCAT + H1 + D2, (j + 1) * CONCAT))
    return jnp.asarray(perm, jnp.int32)


def pack_params(p):
    """Replicate per-sample weights into 8-way block-diagonal bf16 matrices and
    pack all biases into one f32 row.  Done once, outside the kernel."""
    # per-sample stage-1 map: [Linear(8->16) | Identity(4) | Linear(6->8)] -> (18, 28)
    w_s1 = jnp.zeros((D_IN, CONCAT), jnp.float32)
    w_s1 = w_s1.at[0:D1, 0:H1].set(p["w1"])
    w_s1 = w_s1.at[D1:D1 + D2, H1:H1 + D2].set(jnp.eye(D2, dtype=jnp.float32))
    w_s1 = w_s1.at[D1 + D2:, H1 + D2:].set(p["w3"])
    b_s1 = jnp.concatenate([p["b1"].reshape(-1),
                            jnp.zeros((D2,), jnp.float32),
                            p["b3"].reshape(-1)])

    perm = _stage1_perm()
    w1 = _block_diag(w_s1)[:, perm]                      # columns grouped by act
    b1 = _tile_bias(b_s1)[:, perm]
    w2 = _block_diag(p["wf1"])[perm, :]                  # rows permuted to match
    w3 = _block_diag(p["wf2"])
    w4 = _block_diag(p["wd1"])
    w5 = _block_diag(p["wd2"])

    bias = jnp.zeros((1, B_TOTAL), jnp.float32)
    for off, b in ((B1_OFF, b1), (B2_OFF, _tile_bias(p["bf1"])),
                   (B3_OFF, _tile_bias(p["bf2"])), (B4_OFF, _tile_bias(p["bd1"])),
                   (B5_OFF, _tile_bias(p["bd2"]))):
        bias = bias.at[0, off:off + b.shape[1]].set(b[0])

    bf = lambda w: w.astype(jnp.bfloat16)
    return (bf(w1), bf(w2), bf(w3), bf(w4), bf(w5), bias)


# ---------------------------------------------------------------------------
# forward wrapper
# ---------------------------------------------------------------------------
def ae_forward(X, packed, bmg_max=BMG_MAX):
    """X: (B, 1, D_IN) -> (x_recon (B, D_OUT), z (B, LATENT)); AE.forward, eval mode."""
    B = X.shape[0]
    x = X.reshape(B, D_IN).astype(jnp.float32)           # X.squeeze(1)

    pr = -(-B // G)                                      # packed rows needed
    pr8 = max(8, -(-pr // 8) * 8)                        # multiple of 8 sublanes
    # n_blk >= 2 whenever possible (v7x has 2 TCs; "parallel" axis shards across
    # them), tile capped at bmg_max packed rows to stay within v7x 64 MiB VMEM.
    n_blk = max(2, -(-pr8 // bmg_max)) if pr8 >= 16 else 1
    bmg = -(-(-(-pr8 // n_blk)) // 8) * 8                # ceil(pr8/n_blk), mult of 8
    n_blk = -(-pr8 // bmg)
    pr_pad = n_blk * bmg
    b_pad = pr_pad * G
    if b_pad != B:                                       # ragged batch -> zero pad
        x = jnp.pad(x, ((0, b_pad - B), (0, 0)))
    # pack G samples per lane row (contiguous row-major reshape: no data movement)
    x_p = x.reshape(pr_pad, G * D_IN)

    w1, w2, w3, w4, w5, bias = packed
    full = lambda a: pl.BlockSpec(a.shape, lambda i: (0, 0))

    z_p, xr_p = pl.pallas_call(
        ae_kernel,
        out_shape=(jax.ShapeDtypeStruct((pr_pad, G * LATENT), jnp.float32),
                   jax.ShapeDtypeStruct((pr_pad, G * D_OUT), jnp.float32)),
        grid=(n_blk,),
        in_specs=[pl.BlockSpec((bmg, G * D_IN), lambda i: (i, 0)),
                  full(w1), full(w2), full(w3), full(w4), full(w5), full(bias)],
        out_specs=(pl.BlockSpec((bmg, G * LATENT), lambda i: (i, 0)),
                   pl.BlockSpec((bmg, G * D_OUT), lambda i: (i, 0))),
        compiler_params=pltpu.CompilerParams(
            dimension_semantics=("parallel",),
            vmem_limit_bytes=48 * 1024 * 1024),
    )(x_p, w1, w2, w3, w4, w5, bias)

    z = z_p.reshape(b_pad, LATENT)[:B]                   # contiguous un-pack (free)
    xr = xr_p.reshape(b_pad, D_OUT)[:B]
    return xr, z


# ---------------------------------------------------------------------------
# parameters + pure-JAX reference (mirrors the PyTorch eval-mode forward)
# ---------------------------------------------------------------------------
def make_params(key):
    ks = jax.random.split(key, 12)
    n = lambda k, shape, s=0.2: jax.random.normal(k, shape, jnp.float32) * s
    return {
        "w1": n(ks[0], (D1, H1)),        "b1": n(ks[1], (H1,)),
        "w3": n(ks[2], (D3, H3)),        "b3": n(ks[3], (H3,)),
        "wf1": n(ks[4], (CONCAT, FC1)),  "bf1": n(ks[5], (FC1,)),
        "wf2": n(ks[6], (FC1, LATENT)),  "bf2": n(ks[7], (LATENT,)),
        "wd1": n(ks[8], (LATENT, DEC1)), "bd1": n(ks[9], (DEC1,)),
        "wd2": n(ks[10], (DEC1, D_OUT)), "bd2": n(ks[11], (D_OUT,)),
    }


def ref_forward(X, p):
    x = X.reshape(X.shape[0], D_IN)
    x1, x2, x3 = x[:, :D1], x[:, D1:D1 + D2], x[:, D1 + D2:]
    h1 = jax.nn.relu(x1 @ p["w1"] + p["b1"])
    h3 = jnp.tanh(x3 @ p["w3"] + p["b3"])
    c = jnp.concatenate([h1, x2, h3], axis=1)
    g = jnp.tanh(c @ p["wf1"] + p["bf1"])
    z = jnp.tanh(g @ p["wf2"] + p["bf2"])
    d = jnp.tanh(z @ p["wd1"] + p["bd1"])
    xr = jax.nn.sigmoid(d @ p["wd2"] + p["bd2"])
    return xr, z


if __name__ == "__main__":
    key = jax.random.PRNGKey(0)
    k_x, k_p = jax.random.split(key)
    params = make_params(k_p)
    packed = pack_params(params)

    # 64: single block; 37: ragged pad path; 160: multi-block (n_blk>=2) + pad path
    for B in (64, 37, 160):
        X = jax.random.normal(jax.random.fold_in(k_x, B), (B, 1, D_IN), jnp.float32)
        xr, z = jax.block_until_ready(ae_forward(X, packed))
        xr_exp, z_exp = ref_forward(X, params)
        assert z.shape == (B, LATENT) and xr.shape == (B, D_OUT)
        # bf16 MXU operands -> loosened tolerance vs. the f32 reference
        np.testing.assert_allclose(np.asarray(z), np.asarray(z_exp),
                                   rtol=2e-2, atol=2e-2)
        np.testing.assert_allclose(np.asarray(xr), np.asarray(xr_exp),
                                   rtol=2e-2, atol=2e-2)
    print("KERNEL_OK")
</pallas_src>

<mosaic_0001>
module attributes {stable_mosaic.version = 11 : i64} {
  func.func @ae_kernel(%arg0: i32, %arg1: memref<8x144xf32, #tpu.memory_space<vmem>>, %arg2: memref<144x224xbf16, #tpu.memory_space<vmem>>, %arg3: memref<224x256xbf16, #tpu.memory_space<vmem>>, %arg4: memref<256x128xbf16, #tpu.memory_space<vmem>>, %arg5: memref<128x256xbf16, #tpu.memory_space<vmem>>, %arg6: memref<256x144xbf16, #tpu.memory_space<vmem>>, %arg7: memref<1x1152xf32, #tpu.memory_space<vmem>>, %arg8: memref<8x128xf32, #tpu.memory_space<vmem>>, %arg9: memref<8x144xf32, #tpu.memory_space<vmem>>) attributes {dimension_semantics = [#tpu.dimension_semantics<parallel>], iteration_bounds = array<i64: 1>, scalar_prefetch = 0 : i64, scratch_operands = 0 : i64, tpu.core_type = #tpu.core_type<tc>, window_params = [{transform_indices = @transform_0, window_bounds = array<i64: 8, 144>}, {pipeline_mode = #tpu.pipeline_mode<synchronous>, transform_indices = @transform_1, window_bounds = array<i64: 144, 224>}, {pipeline_mode = #tpu.pipeline_mode<synchronous>, transform_indices = @transform_2, window_bounds = array<i64: 224, 256>}, {pipeline_mode = #tpu.pipeline_mode<synchronous>, transform_indices = @transform_3, window_bounds = array<i64: 256, 128>}, {pipeline_mode = #tpu.pipeline_mode<synchronous>, transform_indices = @transform_4, window_bounds = array<i64: 128, 256>}, {pipeline_mode = #tpu.pipeline_mode<synchronous>, transform_indices = @transform_5, window_bounds = array<i64: 256, 144>}, {pipeline_mode = #tpu.pipeline_mode<synchronous>, transform_indices = @transform_6, window_bounds = array<i64: 1, 1152>}, {transform_indices = @transform_7, window_bounds = array<i64: 8, 128>}, {transform_indices = @transform_8, window_bounds = array<i64: 8, 144>}]} {
    %c0 = arith.constant 0 : index
    %c0_0 = arith.constant 0 : index
    %0 = vector.load %arg1[%c0, %c0_0] : memref<8x144xf32, #tpu.memory_space<vmem>>, vector<8x144xf32>
    %1 = arith.truncf %0 : vector<8x144xf32> to vector<8x144xbf16>
    %c0_1 = arith.constant 0 : index
    %c0_2 = arith.constant 0 : index
    %2 = vector.load %arg7[%c0_1, %c0_2] : memref<1x1152xf32, #tpu.memory_space<vmem>>, vector<1x224xf32>
    %c0_3 = arith.constant 0 : index
    %c256 = arith.constant 256 : index
    %3 = vector.load %arg7[%c0_3, %c256] : memref<1x1152xf32, #tpu.memory_space<vmem>>, vector<1x256xf32>
    %c0_4 = arith.constant 0 : index
    %c512 = arith.constant 512 : index
    %4 = vector.load %arg7[%c0_4, %c512] : memref<1x1152xf32, #tpu.memory_space<vmem>>, vector<1x128xf32>
    %c0_5 = arith.constant 0 : index
    %c640 = arith.constant 640 : index
    %5 = vector.load %arg7[%c0_5, %c640] : memref<1x1152xf32, #tpu.memory_space<vmem>>, vector<1x256xf32>
    %c0_6 = arith.constant 0 : index
    %c896 = arith.constant 896 : index
    %6 = vector.load %arg7[%c0_6, %c896] : memref<1x1152xf32, #tpu.memory_space<vmem>>, vector<1x144xf32>
    %c0_7 = arith.constant 0 : index
    %c0_8 = arith.constant 0 : index
    %7 = vector.load %arg2[%c0_7, %c0_8] : memref<144x224xbf16, #tpu.memory_space<vmem>>, vector<144x224xbf16>
    %cst = arith.constant dense<0.000000e+00> : vector<8x224xf32>
    %8 = tpu.matmul %1, %7, %cst {dimension_numbers = #tpu.dot_dimension_numbers<[1], [0], [0], [1], [0, 0, 1, 1], [], []>} : vector<8x144xbf16>, vector<144x224xbf16>, vector<8x224xf32> -> vector<8x224xf32>
    %9 = vector.broadcast %2 : vector<1x224xf32> to vector<8x224xf32>
    %10 = arith.addf %8, %9 : vector<8x224xf32>
    %11 = vector.extract_strided_slice %10 {offsets = [0, 0], sizes = [8, 128], strides = [1, 1]} : vector<8x224xf32> to vector<8x128xf32>
    %cst_9 = arith.constant 0.000000e+00 : f32
    %12 = vector.broadcast %cst_9 : f32 to vector<8x128xf32>
    %13 = arith.maximumf %11, %12 : vector<8x128xf32>
    %14 = vector.extract_strided_slice %10 {offsets = [0, 128], sizes = [8, 96], strides = [1, 1]} : vector<8x224xf32> to vector<8x96xf32>
    %15 = tpu.iota {dimensions = array<i32: 1>} : vector<8x96xi32>
    %c32_i32 = arith.constant 32 : i32
    %16 = vector.broadcast %c32_i32 : i32 to vector<8x96xi32>
    %17 = arith.cmpi slt, %15, %16 : vector<8x96xi32>
    %18 = math.tanh %14 : vector<8x96xf32>
    %19 = arith.select %17, %14, %18 : vector<8x96xi1>, vector<8x96xf32>
    %20 = tpu.concatenate %13, %19 in 1 : vector<8x128xf32>, vector<8x96xf32> -> vector<8x224xf32>
    %21 = arith.truncf %20 : vector<8x224xf32> to vector<8x224xbf16>
    %c0_10 = arith.constant 0 : index
    %c0_11 = arith.constant 0 : index
    %22 = vector.load %arg3[%c0_10, %c0_11] : memref<224x256xbf16, #tpu.memory_space<vmem>>, vector<224x256xbf16>
    %cst_12 = arith.constant dense<0.000000e+00> : vector<8x256xf32>
    %23 = tpu.matmul %21, %22, %cst_12 {dimension_numbers = #tpu.dot_dimension_numbers<[1], [0], [0], [1], [0, 0, 1, 1], [], []>} : vector<8x224xbf16>, vector<224x256xbf16>, vector<8x256xf32> -> vector<8x256xf32>
    %24 = vector.broadcast %3 : vector<1x256xf32> to vector<8x256xf32>
    %25 = arith.addf %23, %24 : vector<8x256xf32>
    %26 = math.tanh %25 : vector<8x256xf32>
    %27 = arith.truncf %26 : vector<8x256xf32> to vector<8x256xbf16>
    %c0_13 = arith.constant 0 : index
    %c0_14 = arith.constant 0 : index
    %28 = vector.load %arg4[%c0_13, %c0_14] : memref<256x128xbf16, #tpu.memory_space<vmem>>, vector<256x128xbf16>
    %cst_15 = arith.constant dense<0.000000e+00> : vector<8x128xf32>
    %29 = tpu.matmul %27, %28, %cst_15 {dimension_numbers = #tpu.dot_dimension_numbers<[1], [0], [0], [1], [0, 0, 1, 1], [], []>} : vector<8x256xbf16>, vector<256x128xbf16>, vector<8x128xf32> -> vector<8x128xf32>
    %30 = vector.broadcast %4 : vector<1x128xf32> to vector<8x128xf32>
    %31 = arith.addf %29, %30 : vector<8x128xf32>
    %32 = math.tanh %31 : vector<8x128xf32>
    %c0_16 = arith.constant 0 : index
    %c0_17 = arith.constant 0 : index
    %33 = vector.load %arg8[%c0_16, %c0_17] : memref<8x128xf32, #tpu.memory_space<vmem>>, vector<8x128xf32>
    tpu.vector_store %arg8[%c0_16, %c0_17], %32 {strides = array<i32>} : memref<8x128xf32, #tpu.memory_space<vmem>>, vector<8x128xf32>,
    %34 = arith.truncf %32 : vector<8x128xf32> to vector<8x128xbf16>
    %c0_18 = arith.constant 0 : index
    %c0_19 = arith.constant 0 : index
    %35 = vector.load %arg5[%c0_18, %c0_19] : memref<128x256xbf16, #tpu.memory_space<vmem>>, vector<128x256xbf16>
    %cst_20 = arith.constant dense<0.000000e+00> : vector<8x256xf32>
    %36 = tpu.matmul %34, %35, %cst_20 {dimension_numbers = #tpu.dot_dimension_numbers<[1], [0], [0], [1], [0, 0, 1, 1], [], []>} : vector<8x128xbf16>, vector<128x256xbf16>, vector<8x256xf32> -> vector<8x256xf32>
    %37 = vector.broadcast %5 : vector<1x256xf32> to vector<8x256xf32>
    %38 = arith.addf %36, %37 : vector<8x256xf32>
    %39 = math.tanh %38 : vector<8x256xf32>
    %40 = arith.truncf %39 : vector<8x256xf32> to vector<8x256xbf16>
    %c0_21 = arith.constant 0 : index
    %c0_22 = arith.constant 0 : index
    %41 = vector.load %arg6[%c0_21, %c0_22] : memref<256x144xbf16, #tpu.memory_space<vmem>>, vector<256x144xbf16>
    %cst_23 = arith.constant dense<0.000000e+00> : vector<8x144xf32>
    %42 = tpu.matmul %40, %41, %cst_23 {dimension_numbers = #tpu.dot_dimension_numbers<[1], [0], [0], [1], [0, 0, 1, 1], [], []>} : vector<8x256xbf16>, vector<256x144xbf16>, vector<8x144xf32> -> vector<8x144xf32>
    %43 = vector.broadcast %6 : vector<1x144xf32> to vector<8x144xf32>
    %44 = arith.addf %42, %43 : vector<8x144xf32>
    %cst_24 = arith.constant 5.000000e-01 : f32
    %45 = vector.broadcast %cst_24 : f32 to vector<8x144xf32>
    %46 = arith.mulf %45, %44 : vector<8x144xf32>
    %47 = math.tanh %46 : vector<8x144xf32>
    %cst_25 = arith.constant 5.000000e-01 : f32
    %48 = vector.broadcast %cst_25 : f32 to vector<8x144xf32>
    %49 = arith.mulf %48, %47 : vector<8x144xf32>
    %cst_26 = arith.constant 5.000000e-01 : f32
    %50 = vector.broadcast %cst_26 : f32 to vector<8x144xf32>
    %51 = arith.addf %49, %50 : vector<8x144xf32>
    %c0_27 = arith.constant 0 : index
    %c0_28 = arith.constant 0 : index
    %52 = vector.load %arg9[%c0_27, %c0_28] : memref<8x144xf32, #tpu.memory_space<vmem>>, vector<8x144xf32>
    tpu.vector_store %arg9[%c0_27, %c0_28], %51 {strides = array<i32>} : memref<8x144xf32, #tpu.memory_space<vmem>>, vector<8x144xf32>,
    return
  }
  func.func @transform_0(%arg0: i32) -> (i32, i32) {
    %c0_i32 = arith.constant 0 : i32
    %c0_i32_0 = arith.constant 0 : i32
    return %arg0, %c0_i32 : i32, i32
  }
  func.func @transform_1(%arg0: i32) -> (i32, i32) {
    %c0_i32 = arith.constant 0 : i32
    %c0_i32_0 = arith.constant 0 : i32
    %c0_i32_1 = arith.constant 0 : i32
    return %c0_i32, %c0_i32_0 : i32, i32
  }
  func.func @transform_2(%arg0: i32) -> (i32, i32) {
    %c0_i32 = arith.constant 0 : i32
    %c0_i32_0 = arith.constant 0 : i32
    %c0_i32_1 = arith.constant 0 : i32
    return %c0_i32, %c0_i32_0 : i32, i32
  }
  func.func @transform_3(%arg0: i32) -> (i32, i32) {
    %c0_i32 = arith.constant 0 : i32
    %c0_i32_0 = arith.constant 0 : i32
    %c0_i32_1 = arith.constant 0 : i32
    return %c0_i32, %c0_i32_0 : i32, i32
  }
  func.func @transform_4(%arg0: i32) -> (i32, i32) {
    %c0_i32 = arith.constant 0 : i32
    %c0_i32_0 = arith.constant 0 : i32
    %c0_i32_1 = arith.constant 0 : i32
    return %c0_i32, %c0_i32_0 : i32, i32
  }
  func.func @transform_5(%arg0: i32) -> (i32, i32) {
    %c0_i32 = arith.constant 0 : i32
    %c0_i32_0 = arith.constant 0 : i32
    %c0_i32_1 = arith.constant 0 : i32
    return %c0_i32, %c0_i32_0 : i32, i32
  }
  func.func @transform_6(%arg0: i32) -> (i32, i32) {
    %c0_i32 = arith.constant 0 : i32
    %c0_i32_0 = arith.constant 0 : i32
    %c0_i32_1 = arith.constant 0 : i32
    return %c0_i32, %c0_i32_0 : i32, i32
  }
  func.func @transform_7(%arg0: i32) -> (i32, i32) {
    %c0_i32 = arith.constant 0 : i32
    %c0_i32_0 = arith.constant 0 : i32
    return %arg0, %c0_i32 : i32, i32
  }
  func.func @transform_8(%arg0: i32) -> (i32, i32) {
    %c0_i32 = arith.constant 0 : i32
    %c0_i32_0 = arith.constant 0 : i32
    return %arg0, %c0_i32 : i32, i32
  }
}

</mosaic_0001>

<bundles_post_ra>
// kernel: tpu_custom_call.1
= control target key start
LH: loop header
LB: loop body
LE: loop exit
PB: predicated region body
PF: predicated region fallthrough
CT: control target
= control target key end

     0   :  { %14 = vsyncpa [#allocation3], 0  ;;  %s1865_s0 = inlined_call_operand.vmem [shape: f32[8,144], index: 0, kind: input, shape index: {}]   ;;  %s1866_s1 = inlined_call_operand.vmem [shape: bf16[144,224], index: 1, kind: input, shape index: {}]   ;;  %s1867_s2 = inlined_call_operand.vmem [shape: bf16[224,256], index: 2, kind: input, shape index: {}]   ;;  %s1868_s3 = inlined_call_operand.hbm [shape: bf16[256,128], index: 3, kind: input, shape index: {}]   ;;  %s1869_s4 = inlined_call_operand.hbm [shape: bf16[128,256], index: 4, kind: input, shape index: {}]   ;;  %s1870_s5 = inlined_call_operand.vmem [shape: bf16[256,144], index: 5, kind: input, shape index: {}]   ;;  %s1871_s6 = inlined_call_operand.vmem [shape: f32[1,1152], index: 6, kind: input, shape index: {}]   ;;  %s1872_s7 = inlined_call_operand.hbm [shape: f32[8,128], index: 7, kind: output, shape index: {0}]   ;;  %s1873_s8 = inlined_call_operand.hbm [shape: f32[8,144], index: 8, kind: output, shape index: {1}]  }
   0x1   :  { %15 = vsyncpa [#allocation6], 0 }
   0x2   :  { %16 = vsyncpa [#allocation4], 0 }
   0x3   :  { %17 = vsyncpa [#allocation9], 0  ;;  %s1494_s27 = smov [#allocation2]   ;;  %s1398_s9 = scalar_lea.hbm %s1868_s3, 2048 }
   0x4   :  { %s29_s28 = sshll.u32 %s1494_s27, 4  ;;  %p1399_p0 = scmp.ne.s32.totalorder %s1868_s3, %s1398_s9  ;;  %s30_s28 = int_to_ptr.vmem [resolvable:$true] %s29_s28 }
   0x5   :  { %p1402_p1 = scmp.lt.u32.totalorder %s1398_s9, %s1868_s3 }
   0x7   :  { %p1404_p2 = pnand %p1402_p1, %p1399_p0 }
   0x9   :  { %1407 = shalt.err (!%p1404_p2)
}
   0xa   :  { %s1408_s14 = scalar_lea.vmem %s30_s28, 2048  ;;  %p1413_p4 = scmp.lt.s32.totalorder %s30_s28, %s30_s28 }
   0xb   :  { %p1409_p3 = scmp.ne.s32.totalorder %s30_s28, %s1408_s14  ;;  %p1414_p5 = scmp.lt.s32.totalorder %s1408_s14, %s1408_s14 }
   0xd   :  { %p1415_p6 = por %p1414_p5, %p1413_p4 }
   0xf   :  { %p1416_p7 = pnand %p1415_p6, %p1409_p3 }
  0x11   :  { %1419 = shalt.err (!%p1416_p7)
}
  0x12   :  { %s1495_s15 = smov 64   ;;  %s1496_s16 = smov 4  }
  0x13   :  { %35 = dma.hbm_to_vmem [thread:$0]  %s1868_s3, 2048, %s30_s28, [#allocation3], %s1495_s15, %s1495_s15, %s1496_s16  }
  0x14   :  { %s1497_s19 = smov [#allocation5]   ;;  %s1420_s23 = scalar_lea.hbm %s1869_s4, 2048 }
  0x15   :  { %s41_s20 = sshll.u32 %s1497_s19, 4  ;;  %p1421_p8 = scmp.ne.s32.totalorder %s1869_s4, %s1420_s23  ;;  %s42_s20 = int_to_ptr.vmem [resolvable:$true] %s41_s20 }
  0x16   :  { %p1424_p9 = scmp.lt.u32.totalorder %s1420_s23, %s1869_s4 }
  0x18   :  { %p1426_p10 = pnand %p1424_p9, %p1421_p8 }
  0x1a   :  { %1429 = shalt.err (!%p1426_p10)
}
  0x1b   :  { %s1430_s29 = scalar_lea.vmem %s42_s20, 2048  ;;  %p1435_p12 = scmp.lt.s32.totalorder %s42_s20, %s42_s20 }
  0x1c   :  { %p1431_p11 = scmp.ne.s32.totalorder %s42_s20, %s1430_s29  ;;  %p1436_p13 = scmp.lt.s32.totalorder %s1430_s29, %s1430_s29 }
  0x1e   :  { %p1437_p0 = por %p1436_p13, %p1435_p12 }
  0x20   :  { %p1438_p1 = pnand %p1437_p0, %p1431_p11 }
  0x22   :  { %1441 = shalt.err (!%p1438_p1)
}
  0x23   :  { %s1498_s3 = smov 128   ;;  %s1499_s28 = smov 8  }
  0x24   :  { %47 = dma.hbm_to_vmem [thread:$0]  %s1869_s4, 2048, %s42_s20, [#allocation6], %s1498_s3, %s1498_s3, %s1499_s28  }
  0x25   :  { %1486 = dma.done.wait [#allocation3], 2048  }
  0x26   :  { %1487 = vsyncadd [#allocation3], 4294965248 }
  0x27   :  { %1488 = dma.done.wait [#allocation6], 2048  }
  0x28   :  { %1489 = vsyncadd [#allocation6], 4294965248  ;;  %v1225_v0 = vld [vmem:[%s1866_s1 + $0x4] ss:$8 sps:$4 sm:$0xff]   ;;  %v1227_v1 = vld [vmem:[%s1866_s1] ss:$8 sps:$4 sm:$0xff]   ;;  %v87_v51 = vlaneseq }
  0x29   :  { %191 = vmatprep.subr.bf16.mxu0 %v1225_v0  ;;  %v1228_v2 = vld [vmem:[%s1866_s1 + $0x14] ss:$8 sps:$4 sm:$0xff]   ;;  %v1230_v3 = vld [vmem:[%s1866_s1 + $0x10] ss:$8 sps:$4 sm:$0xff]   ;;  %v1231_v4 = vld [vmem:[%s1866_s1 + $0x24] ss:$8 sps:$4 sm:$0xff]  }
  0x2a   :  { %192 = vmatpush1.bf16.msra.mxu0 %v1227_v1  ;;  %v1233_v5 = vld [vmem:[%s1866_s1 + $0x20] ss:$8 sps:$4 sm:$0xff]   ;;  %v1234_v6 = vld [vmem:[%s1866_s1 + $0x34] ss:$8 sps:$4 sm:$0xff]   ;;  %v1236_v7 = vld [vmem:[%s1866_s1 + $0x30] ss:$8 sps:$4 sm:$0xff]  }
  0x2b   :  { %193 = vmatprep.subr.bf16.mxu0 %v1228_v2  ;;  %v1237_v8 = vld [vmem:[%s1866_s1 + $0x44] ss:$8 sps:$4 sm:$0xff]   ;;  %vm187_vm0 = vcmask 130048   ;;  %v1254_v12 = vld [vmem:[%s1867_s2] ss:$8 sps:$4 sm:$0xff]   ;;  %v88_v52 = vshrl.u32 %v87_v51, 7 }
  0x2c   :  { %v60_v9 = vld [vmem:[%s1865_s0 + $0x8] sm:$0xff]  ;;  %v1255_v13 = vld [vmem:[%s1867_s2 + $0x14] ss:$8 sps:$4 sm:$0xff]   ;;  %v1257_v16 = vld [vmem:[%s1867_s2 + $0x10] ss:$8 sps:$4 sm:$0xff]   ;;  %v234_v63 = vand.u32 127, %v87_v51 }
  0x2d   :  { %v62_v10 = vpack.c.bf16 %v60_v9, %v60_v9  ;;  %v1252_v11 = vld [vmem:[%s1867_s2 + $0x4] ss:$8 sps:$4 sm:$0xff]   ;;  %v1239_v14 = vld [vmem:[%s1866_s1 + $0x40] ss:$8 sps:$4 sm:$0xff]   ;;  %v1240_v15 = vld [vmem:[%s1866_s1 + $0x54] ss:$8 sps:$4 sm:$0xff]  }
  0x2e   :  { %194 = vmatpush1.bf16.msra.mxu0 %v1230_v3  ;;  %423 = vmatprep.subr.bf16.mxu1 %v1252_v11  ;;  %v1258_v17 = vld [vmem:[%s1867_s2 + $0x24] ss:$8 sps:$4 sm:$0xff]   ;;  %v1242_v18 = vld [vmem:[%s1866_s1 + $0x50] ss:$8 sps:$4 sm:$0xff]   ;;  %v1260_v20 = vld [vmem:[%s1867_s2 + $0x20] ss:$8 sps:$4 sm:$0xff]  }
  0x2f   :  { %195 = vmatprep.subr.bf16.mxu0 %v1231_v4  ;;  %1099 = vmatprep.mubr.msk.bf16.mxu0 %vm187_vm0, %v62_v10  ;;  %v1243_v19 = vld [vmem:[%s1866_s1 + $0x64] ss:$8 sps:$4 sm:$0xff]   ;;  %v1261_v21 = vld [vmem:[%s1867_s2 + $0x34] ss:$8 sps:$4 sm:$0xff]   ;;  %v1245_v22 = vld [vmem:[%s1866_s1 + $0x60] ss:$8 sps:$4 sm:$0xff]  }
  0x30   :  { %424 = vmatpush1.bf16.msra.mxu1 %v1254_v12  ;;  %v1246_v23 = vld [vmem:[%s1866_s1 + $0x74] ss:$8 sps:$4 sm:$0xff]   ;;  %v1248_v24 = vld [vmem:[%s1866_s1 + $0x70] ss:$8 sps:$4 sm:$0xff]   ;;  %v1264_v26 = vld [vmem:[%s1867_s2 + $0x44] ss:$8 sps:$4 sm:$0xff]  }
  0x31   :  { %425 = vmatprep.subr.bf16.mxu1 %v1255_v13  ;;  %v1263_v25 = vld [vmem:[%s1867_s2 + $0x30] ss:$8 sps:$4 sm:$0xff]   ;;  %v1249_v27 = vld [vmem:[%s1866_s1 + $0x84] ss:$8 sps:$4 sm:$0xff]   ;;  %v1266_v28 = vld [vmem:[%s1867_s2 + $0x40] ss:$8 sps:$4 sm:$0xff]  }
  0x32   :  { %196 = vmatpush1.bf16.msra.mxu0 %v1233_v5  ;;  %v1267_v29 = vld [vmem:[%s1867_s2 + $0x54] ss:$8 sps:$4 sm:$0xff]   ;;  %v1251_v30 = vld [vmem:[%s1866_s1 + $0x80] ss:$8 sps:$4 sm:$0xff]   ;;  %v1269_v32 = vld [vmem:[%s1867_s2 + $0x50] ss:$8 sps:$4 sm:$0xff]  }
  0x33   :  { %197 = vmatprep.subr.bf16.mxu0 %v1234_v6  ;;  %v59_v31 = vld [vmem:[%s1865_s0] sm:$0xff]  ;;  %v1273_v36 = vld [vmem:[%s1867_s2 + $0x74] ss:$8 sps:$4 sm:$0xff]   ;;  %v1275_v37 = vld [vmem:[%s1867_s2 + $0x70] ss:$8 sps:$4 sm:$0xff]   ;;  %v1717_v53 = vsub.s32 1, %v88_v52 }
  0x34   :  { %426 = vmatpush1.bf16.msra.mxu1 %v1257_v16  ;;  %v1270_v33 = vld [vmem:[%s1867_s2 + $0x64] ss:$8 sps:$4 sm:$0xff]   ;;  %v61_v34 = vpack.c.bf16 %v59_v31, %v59_v31  ;;  %v1272_v35 = vld [vmem:[%s1867_s2 + $0x60] ss:$8 sps:$4 sm:$0xff]   ;;  %v1279_v40 = vld [vmem:[%s1867_s2 + $0x94] ss:$8 sps:$4 sm:$0xff]  }
  0x35   :  { %427 = vmatprep.subr.bf16.mxu1 %v1258_v17  ;;  %v1276_v38 = vld [vmem:[%s1867_s2 + $0x84] ss:$8 sps:$4 sm:$0xff]   ;;  %v1278_v39 = vld [vmem:[%s1867_s2 + $0x80] ss:$8 sps:$4 sm:$0xff]   ;;  %v1281_v41 = vld [vmem:[%s1867_s2 + $0x90] ss:$8 sps:$4 sm:$0xff]  }
  0x36   :  { %198 = vmatpush1.bf16.msra.mxu0 %v1236_v7  ;;  %v1282_v42 = vld [vmem:[%s1867_s2 + $0xa4] ss:$8 sps:$4 sm:$0xff]   ;;  %v1284_v43 = vld [vmem:[%s1867_s2 + $0xa0] ss:$8 sps:$4 sm:$0xff]   ;;  %v1285_v44 = vld [vmem:[%s1867_s2 + $0xb4] ss:$8 sps:$4 sm:$0xff]  }
  0x37   :  { %199 = vmatprep.subr.bf16.mxu0 %v1237_v8  ;;  %v1287_v45 = vld [vmem:[%s1867_s2 + $0xb0] ss:$8 sps:$4 sm:$0xff]   ;;  %v1288_v46 = vld [vmem:[%s1867_s2 + $0xc4] ss:$8 sps:$4 sm:$0xff]   ;;  %v1290_v47 = vld [vmem:[%s1867_s2 + $0xc0] ss:$8 sps:$4 sm:$0xff]  }
  0x38   :  { %428 = vmatpush1.bf16.msra.mxu1 %v1260_v20  ;;  %v1291_v48 = vld [vmem:[%s1867_s2 + $0xd4] ss:$8 sps:$4 sm:$0xff]   ;;  %v1293_v49 = vld [vmem:[%s1867_s2 + $0xd0] ss:$8 sps:$4 sm:$0xff]   ;;  %v1294_v50 = vld [vmem:[#allocation2 + $0x40] sm:$0xff]   ;;  %v1723_v57 = vsub.s32 0, %v88_v52 }
  0x39   :  { %429 = vmatprep.subr.bf16.mxu1 %v1261_v21  ;;  %v63_v54 = vld [vmem:[%s1871_s6] sm:$0x3]  ;;  %vm235_vm1 = vcmp.lt.s32.totalorder %v234_v63, 32  ;;  %vm419_vm2 = vcmask 785408   ;;  %v1296_v7 = vld [vmem:[#allocation2 + $0x48] sm:$0xff]   ;;  %v1298_v9 = vld [vmem:[#allocation2 + $0x50] sm:$0xff]  }
  0x3a   :  { %200 = vmatpush1.bf16.msra.mxu0 %v1239_v14  ;;  %v94_v55 = vrot.slane %v63_v54, %v1717_v53  ;;  %v90_v62 = vrot.slane %v63_v54, %v1723_v57  ;;  %v1295_v5 = vld [vmem:[#allocation2] sm:$0xff]   ;;  %v1297_v8 = vld [vmem:[#allocation2 + $0x8] sm:$0xff]   ;;  %v1299_v10 = vld [vmem:[#allocation2 + $0x10] sm:$0xff]  }
  0x3b   :  { %201 = vmatprep.subr.bf16.mxu0 %v1240_v15  ;;  %v1300_v11 = vld [vmem:[#allocation2 + $0x58] sm:$0xff]   ;;  %v1302_v13 = vld [vmem:[#allocation2 + $0x60] sm:$0xff]   ;;  %v1304_v15 = vld [vmem:[#allocation2 + $0x68] sm:$0xff]  }
  0x3c   :  { %430 = vmatpush1.bf16.msra.mxu1 %v1263_v25  ;;  %v1301_v12 = vld [vmem:[#allocation2 + $0x18] sm:$0xff]   ;;  %v1303_v14 = vld [vmem:[#allocation2 + $0x20] sm:$0xff]   ;;  %v1305_v16 = vld [vmem:[#allocation2 + $0x28] sm:$0xff]  }
  0x3d   :  { %431 = vmatprep.subr.bf16.mxu1 %v1264_v26  ;;  %v1306_v17 = vld [vmem:[#allocation2 + $0x70] sm:$0xff]   ;;  %v1309_v20 = vld [vmem:[#allocation2 + $0x38] sm:$0xff]   ;;  %v1312_v21 = vld [vmem:[#allocation5 + $0x4] ss:$8 sps:$4 sm:$0xff]  }
  0x3e   :  { %202 = vmatpush1.bf16.msra.mxu0 %v1242_v18  ;;  %v1307_v18 = vld [vmem:[#allocation2 + $0x30] sm:$0xff]   ;;  %v1334_v51 = vld [vmem:[%s1870_s5] ss:$8 sps:$4 sm:$0xff]   ;;  %v1336_v52 = vld [vmem:[%s1870_s5 + $0x4] ss:$8 sps:$4 sm:$0xff]  }
  0x3f   :  { %203 = vmatprep.subr.bf16.mxu0 %v1243_v19  ;;  %v1308_v19 = vld [vmem:[#allocation2 + $0x78] sm:$0xff]  }
  0x40   :  { %432 = vmatpush1.bf16.msra.mxu1 %v1266_v28  ;;  %v1339_v54 = vld [vmem:[%s1870_s5 + $0x14] ss:$8 sps:$4 sm:$0xff]  }
  0x41   :  { %433 = vmatprep.subr.bf16.mxu1 %v1267_v29  ;;  %v1351_v63 = vld [vmem:[%s1870_s5 + $0x54] ss:$8 sps:$4 sm:$0xff]  }
  0x42   :  { %204 = vmatpush1.bf16.msra.mxu0 %v1245_v22  ;;  %v64_v22 = vld [vmem:[%s1871_s6 + $0x2] sm:$0x3] }
  0x43   :  { %205 = vmatprep.subr.bf16.mxu0 %v1246_v23  ;;  %v272_v23 = vrot.slane %v64_v22, %v1723_v57 }
  0x44   :  { %434 = vmatpush1.bf16.msra.mxu1 %v1269_v32 }
  0x45   :  { %435 = vmatprep.subr.bf16.mxu1 %v1270_v33 }
  0x46   :  { %206 = vmatpush1.bf16.msra.mxu0 %v1248_v24  ;;  %v276_v24 = vrot.slane %v64_v22, %v1717_v53  ;;  %v1372_v22 = vld [vmem:[%s1870_s5 + $0xc4] ss:$8 sps:$4 sm:$0xff]  }
  0x47   :  { %207 = vmatprep.subr.bf16.mxu0 %v1249_v27 }
  0x48   :  { %436 = vmatpush1.bf16.msra.mxu1 %v1272_v35 }
  0x49   :  { %437 = vmatprep.subr.bf16.mxu1 %v1273_v36  ;;  %v1315_v36 = vld [vmem:[#allocation5 + $0x14] ss:$8 sps:$4 sm:$0xff]  }
  0x4a   :  { %208 = vmatpush1.bf16.msra.mxu0 %v1251_v30 }
  0x4b   :  { %1000 = vmatprep.subr.bf16.mxu0 %v1336_v52 }
  0x4c   :  { %438 = vmatpush1.bf16.msra.mxu1 %v1275_v37  ;;  %v1313_v37 = vld [vmem:[#allocation5 + $0x10] ss:$8 sps:$4 sm:$0xff]  }
  0x4d   :  { %224 = vmatmul.mubr.bf16.vlgmr.msra.gmra.mrb[0].mxu0 %v61_v34  ;;  %439 = vmatprep.subr.bf16.mxu1 %v1276_v38  ;;  %v1310_v34 = vld [vmem:[#allocation5] ss:$8 sps:$4 sm:$0xff]   ;;  %v1318_v38 = vld [vmem:[#allocation5 + $0x24] ss:$8 sps:$4 sm:$0xff]  }
  0x4e   :  { %1001 = vmatpush1.bf16.msra.mxu0 %v1334_v51 }
  0x4f   :  { %1002 = vmatprep.subr.bf16.mxu0 %v1339_v54 }
  0x50   :  { %440 = vmatpush1.bf16.msra.mxu1 %v1278_v39  ;;  %v1316_v39 = vld [vmem:[#allocation5 + $0x20] ss:$8 sps:$4 sm:$0xff]  }
  0x51   :  { %441 = vmatprep.subr.bf16.mxu1 %v1279_v40  ;;  %v1321_v40 = vld [vmem:[#allocation5 + $0x34] ss:$8 sps:$4 sm:$0xff]  }
  0x54   :  { %442 = vmatpush1.bf16.msra.mxu1 %v1281_v41  ;;  %v1319_v41 = vld [vmem:[#allocation5 + $0x30] ss:$8 sps:$4 sm:$0xff]  }
  0x55   :  { %443 = vmatprep.subr.bf16.mxu1 %v1282_v42  ;;  %v1324_v42 = vld [vmem:[#allocation5 + $0x44] ss:$8 sps:$4 sm:$0xff]  }
  0x58   :  { %444 = vmatpush1.bf16.msra.mxu1 %v1284_v43  ;;  %v1322_v43 = vld [vmem:[#allocation5 + $0x40] ss:$8 sps:$4 sm:$0xff]  }
  0x59   :  { %445 = vmatprep.subr.bf16.mxu1 %v1285_v44  ;;  %v1327_v44 = vld [vmem:[#allocation5 + $0x54] ss:$8 sps:$4 sm:$0xff]  }
  0x5c   :  { %446 = vmatpush1.bf16.msra.mxu1 %v1287_v45  ;;  %v1325_v45 = vld [vmem:[#allocation5 + $0x50] ss:$8 sps:$4 sm:$0xff]  }
  0x5d   :  { %447 = vmatprep.subr.bf16.mxu1 %v1288_v46  ;;  %v1330_v46 = vld [vmem:[#allocation5 + $0x64] ss:$8 sps:$4 sm:$0xff]  }
  0x60   :  { %448 = vmatpush1.bf16.msra.mxu1 %v1290_v47  ;;  %v1328_v47 = vld [vmem:[#allocation5 + $0x60] ss:$8 sps:$4 sm:$0xff]  }
  0x61   :  { %449 = vmatprep.subr.bf16.mxu1 %v1291_v48  ;;  %v1333_v48 = vld [vmem:[#allocation5 + $0x74] ss:$8 sps:$4 sm:$0xff]  }
  0x64   :  { %450 = vmatpush1.bf16.msra.mxu1 %v1293_v49  ;;  %v1331_v49 = vld [vmem:[#allocation5 + $0x70] ss:$8 sps:$4 sm:$0xff]  }
  0x65   :  { %1194 = vmatprep.subr.bf16.mxu1 %v1294_v50  ;;  %v1500_v50 = vmov 0  }
 0x120   :  { %v225_v56 = vpop.f32.mrb[0].mxu0 }
 0x121   :  { %v227_v58 = vpop.f32.mrb[1].mxu0  ;;  %v226_v0 = vadd.f32 %v225_v56, %v90_v62  ;;  %v1342_v56 = vld [vmem:[%s1870_s5 + $0x24] ss:$8 sps:$4 sm:$0xff]   ;;  %v1346_v62 = vld [vmem:[%s1870_s5 + $0x40] ss:$8 sps:$4 sm:$0xff]  }
 0x122   :  { %v228_v59 = vadd.f32 %v227_v58, %v94_v55  ;;  %v229_v60 = vpop.f32.mrb[2].mxu0  ;;  %v1337_v55 = vld [vmem:[%s1870_s5 + $0x10] ss:$8 sps:$4 sm:$0xff]   ;;  %v1340_v58 = vld [vmem:[%s1870_s5 + $0x20] ss:$8 sps:$4 sm:$0xff]  }
 0x123   :  { %v230_v61 = vpop.f32.mrb[3].mxu0  ;;  %v232_v1 = vmax.f32 %v226_v0, 0.0  ;;  %1003 = vmatpush1.bf16.msra.mxu0 %v1337_v55  ;;  %v1343_v60 = vld [vmem:[%s1870_s5 + $0x30] ss:$8 sps:$4 sm:$0xff]  }
 0x124   :  { %1382 = vtanh.f32 %v228_v59  ;;  %1004 = vmatprep.subr.bf16.mxu0 %v1342_v56  ;;  %v1348_v61 = vld [vmem:[%s1870_s5 + $0x44] ss:$8 sps:$4 sm:$0xff]   ;;  %v1349_v0 = vld [vmem:[%s1870_s5 + $0x50] ss:$8 sps:$4 sm:$0xff]  }
 0x125   :  { %v238_v6 = vpack.c.bf16 %v232_v1, %v232_v1  ;;  %v1354_v1 = vld [vmem:[%s1870_s5 + $0x64] ss:$8 sps:$4 sm:$0xff]  }
 0x127   :  { %1005 = vmatpush1.bf16.msra.mxu0 %v1340_v58 }
 0x12e   :  { %v1383_v2 = vpop.eup %1382 }
 0x12f   :  { %v237_v3 = vsel %vm235_vm1, %v228_v59, %v1383_v2  ;;  %v1345_v59 = vld [vmem:[%s1870_s5 + $0x34] ss:$8 sps:$4 sm:$0xff]   ;;  %v1352_v2 = vld [vmem:[%s1870_s5 + $0x60] ss:$8 sps:$4 sm:$0xff]  }
 0x130   :  { %v239_v4 = vpack.c.bf16 %v237_v3, %v237_v3  ;;  %1006 = vmatprep.subr.bf16.mxu0 %v1345_v59  ;;  %v1357_v3 = vld [vmem:[%s1870_s5 + $0x74] ss:$8 sps:$4 sm:$0xff]  }
 0x131   :  { %1007 = vmatpush1.bf16.msra.mxu0 %v1343_v60 }
 0x132   :  { %1128 = vmatprep.mubr.msk.bf16.mxu1 %vm419_vm2, %v239_v4  ;;  %1008 = vmatprep.subr.bf16.mxu0 %v1348_v61  ;;  %v1355_v4 = vld [vmem:[%s1870_s5 + $0x70] ss:$8 sps:$4 sm:$0xff]  }
 0x133   :  { %456 = vmatmul.mubr.bf16.vlgmr.msra.gmra.mrb[0].mxu1 %v238_v6  ;;  %v1358_v6 = vld [vmem:[%s1870_s5 + $0x80] ss:$8 sps:$4 sm:$0xff]  }
 0x134   :  { %1195 = vmatpush3.bf16.msra.mxu1 %v1295_v5  ;;  %v1360_v5 = vld [vmem:[%s1870_s5 + $0x84] ss:$8 sps:$4 sm:$0xff]  }
 0x135   :  { %1196 = vmatprep.subr.bf16.mxu1 %v1296_v7  ;;  %1009 = vmatpush1.bf16.msra.mxu0 %v1346_v62  ;;  %v1363_v7 = vld [vmem:[%s1870_s5 + $0x94] ss:$8 sps:$4 sm:$0xff]  }
 0x136   :  { %1010 = vmatprep.subr.bf16.mxu0 %v1351_v63 }
 0x138   :  { %1197 = vmatpush3.bf16.msra.mxu1 %v1297_v8  ;;  %v1361_v8 = vld [vmem:[%s1870_s5 + $0x90] ss:$8 sps:$4 sm:$0xff]  }
 0x139   :  { %1198 = vmatprep.subr.bf16.mxu1 %v1298_v9  ;;  %1011 = vmatpush1.bf16.msra.mxu0 %v1349_v0  ;;  %v1366_v9 = vld [vmem:[%s1870_s5 + $0xa4] ss:$8 sps:$4 sm:$0xff]  }
 0x13a   :  { %1012 = vmatprep.subr.bf16.mxu0 %v1354_v1 }
 0x13c   :  { %1199 = vmatpush3.bf16.msra.mxu1 %v1299_v10  ;;  %v1364_v10 = vld [vmem:[%s1870_s5 + $0xa0] ss:$8 sps:$4 sm:$0xff]  }
 0x13d   :  { %1200 = vmatprep.subr.bf16.mxu1 %v1300_v11  ;;  %1013 = vmatpush1.bf16.msra.mxu0 %v1352_v2  ;;  %v1369_v11 = vld [vmem:[%s1870_s5 + $0xb4] ss:$8 sps:$4 sm:$0xff]  }
 0x13e   :  { %1014 = vmatprep.subr.bf16.mxu0 %v1357_v3 }
 0x140   :  { %1201 = vmatpush3.bf16.msra.mxu1 %v1301_v12  ;;  %v1367_v12 = vld [vmem:[%s1870_s5 + $0xb0] ss:$8 sps:$4 sm:$0xff]  }
 0x141   :  { %1202 = vmatprep.subr.bf16.mxu1 %v1302_v13  ;;  %1015 = vmatpush1.bf16.msra.mxu0 %v1355_v4 }
 0x142   :  { %1016 = vmatprep.subr.bf16.mxu0 %v1360_v5 }
 0x144   :  { %1203 = vmatpush3.bf16.msra.mxu1 %v1303_v14  ;;  %v1129_v14 = vld [vmem:[%s1871_s6 + $0x4] ss:$0 sm:$0xff] }
 0x145   :  { %1204 = vmatprep.subr.bf16.mxu1 %v1304_v15  ;;  %1017 = vmatpush1.bf16.msra.mxu0 %v1358_v6 }
 0x146   :  { %1018 = vmatprep.subr.bf16.mxu0 %v1363_v7 }
 0x148   :  { %1205 = vmatpush3.bf16.msra.mxu1 %v1305_v16 }
 0x149   :  { %1206 = vmatprep.subr.bf16.mxu1 %v1306_v17  ;;  %1019 = vmatpush1.bf16.msra.mxu0 %v1361_v8 }
 0x14a   :  { %1020 = vmatprep.subr.bf16.mxu0 %v1366_v9 }
 0x14c   :  { %1207 = vmatpush3.bf16.msra.mxu1 %v1307_v18 }
 0x14d   :  { %1208 = vmatprep.subr.bf16.mxu1 %v1308_v19  ;;  %1021 = vmatpush1.bf16.msra.mxu0 %v1364_v10 }
 0x14e   :  { %1022 = vmatprep.subr.bf16.mxu0 %v1369_v11 }
 0x150   :  { %1209 = vmatpush3.bf16.msra.mxu1 %v1309_v20 }
 0x151   :  { %752 = vmatprep.subr.bf16.mxu1 %v1312_v21  ;;  %1023 = vmatpush1.bf16.msra.mxu0 %v1367_v12 }
 0x152   :  { %1024 = vmatprep.subr.bf16.mxu0 %v1372_v22 }
 0x206   :  { %v457_v25 = vpop.f32.mrb[0].mxu1 }
 0x207   :  { %v458_v26 = vadd.f32 %v457_v25, %v272_v23  ;;  %v459_v27 = vpop.f32.mrb[1].mxu1  ;;  %v1370_v23 = vld [vmem:[%s1870_s5 + $0xc0] ss:$8 sps:$4 sm:$0xff]   ;;  %v1373_v25 = vld [vmem:[%s1870_s5 + $0xd0] ss:$8 sps:$4 sm:$0xff]  }
 0x208   :  { %v460_v28 = vadd.f32 %v459_v27, %v276_v24  ;;  %v461_v29 = vpop.f32.mrb[2].mxu1  ;;  %1025 = vmatpush1.bf16.msra.mxu0 %v1370_v23  ;;  %v1375_v24 = vld [vmem:[%s1870_s5 + $0xd4] ss:$8 sps:$4 sm:$0xff]   ;;  %v1376_v27 = vld [vmem:[%s1870_s5 + $0xe0] ss:$8 sps:$4 sm:$0xff]  }
 0x209   :  { %1384 = vtanh.f32 %v458_v26  ;;  %v462_v30 = vpop.f32.mrb[3].mxu1  ;;  %1026 = vmatprep.subr.bf16.mxu0 %v1375_v24  ;;  %v1378_v26 = vld [vmem:[%s1870_s5 + $0xe4] ss:$8 sps:$4 sm:$0xff]   ;;  %v1379_v29 = vld [vmem:[%s1870_s5 + $0xf0] ss:$8 sps:$4 sm:$0xff]  }
 0x20a   :  { %1386 = vtanh.f32 %v460_v28  ;;  %v1381_v28 = vld [vmem:[%s1870_s5 + $0xf4] ss:$8 sps:$4 sm:$0xff]   ;;  %v66_v30 = vld [vmem:[%s1871_s6 + $0x5] sm:$0x3]  ;;  %s1501_s5 = smov [#allocation7]  }
 0x20b   :  { %s1057_s22 = sshll.u32 %s1501_s5, 4  ;;  %s1058_s22 = int_to_ptr.vmem [resolvable:$true] %s1057_s22 }
 0x20c   :  { %1027 = vmatpush1.bf16.msra.mxu0 %v1373_v25  ;;  %s1442_s23 = scalar_lea.vmem %s1058_s22, 128  ;;  %p1447_p3 = scmp.lt.s32.totalorder %s1058_s22, %s1058_s22 }
 0x20d   :  { %1028 = vmatprep.subr.bf16.mxu0 %v1378_v26  ;;  %p1443_p2 = scmp.ne.s32.totalorder %s1058_s22, %s1442_s23  ;;  %p1448_p4 = scmp.lt.s32.totalorder %s1442_s23, %s1442_s23 }
 0x20f   :  { %p1449_p5 = por %p1448_p4, %p1447_p3 }
 0x210   :  { %1029 = vmatpush1.bf16.msra.mxu0 %v1376_v27 }
 0x211   :  { %1030 = vmatprep.subr.bf16.mxu0 %v1381_v28  ;;  %p1450_p6 = pnand %p1449_p5, %p1443_p2 }
 0x213   :  { %v1385_v31 = vpop.eup %1384 }
 0x214   :  { %v1387_v32 = vpop.eup %1386  ;;  %v466_v35 = vpack.c.bf16 %v1385_v31, %v1385_v31  ;;  %1031 = vmatpush1.bf16.msra.mxu0 %v1379_v29  ;;  %v665_v31 = vrot.slane %v66_v30, %v1723_v57 }
 0x215   :  { %v467_v33 = vpack.c.bf16 %v1387_v32, %v1387_v32  ;;  %v669_v32 = vrot.slane %v66_v30, %v1717_v53 }
 0x217   :  { %634 = vmatprep.mubr.bf16.mxu1 %v467_v33 }
 0x218   :  { %635 = vmatmul.mubr.bf16.vlgmr.msra.gmra.mrb[4].mxu1 %v466_v35 }
 0x219   :  { %753 = vmatpush1.bf16.msra.mxu1 %v1310_v34  ;;  %784 = vmatprep.mubr.bf16.mxu1 %v1500_v50 }
 0x21a   :  { %754 = vmatprep.subr.bf16.mxu1 %v1315_v36 }
 0x21d   :  { %755 = vmatpush1.bf16.msra.mxu1 %v1313_v37 }
 0x21e   :  { %756 = vmatprep.subr.bf16.mxu1 %v1318_v38 }
 0x221   :  { %757 = vmatpush1.bf16.msra.mxu1 %v1316_v39 }
 0x222   :  { %758 = vmatprep.subr.bf16.mxu1 %v1321_v40 }
 0x225   :  { %759 = vmatpush1.bf16.msra.mxu1 %v1319_v41 }
 0x226   :  { %760 = vmatprep.subr.bf16.mxu1 %v1324_v42 }
 0x229   :  { %761 = vmatpush1.bf16.msra.mxu1 %v1322_v43 }
 0x22a   :  { %762 = vmatprep.subr.bf16.mxu1 %v1327_v44 }
 0x22d   :  { %763 = vmatpush1.bf16.msra.mxu1 %v1325_v45 }
 0x22e   :  { %764 = vmatprep.subr.bf16.mxu1 %v1330_v46 }
 0x231   :  { %765 = vmatpush1.bf16.msra.mxu1 %v1328_v47 }
 0x232   :  { %766 = vmatprep.subr.bf16.mxu1 %v1333_v48 }
 0x235   :  { %767 = vmatpush1.bf16.msra.mxu1 %v1331_v49 }
 0x2eb   :  { %v1210_v13 = vpop.f32.mrb[4].mxu1 }
 0x2ec   :  { %v1211_v15 = vpop.f32.mrb[5].mxu1 }
 0x2ed   :  { %v1212_v16 = vadd.f32 %v1211_v15, %v1210_v13  ;;  %v1213_v17 = vpop.f32.mrb[6].mxu1 }
 0x2ee   :  { %v1214_v18 = vpop.f32.mrb[7].mxu1 }
 0x2ef   :  { %v637_v19 = vadd.f32 %v1212_v16, %v1129_v14 }
 0x2f1   :  { %1388 = vtanh.f32 %v637_v19 }
 0x2fb   :  { %v1389_v20 = vpop.eup %1388 }
 0x2fc   :  { %643 = vst [vmem:[#allocation7] sm:$0xff] %v1389_v20  ;;  %v644_v21 = vpack.c.bf16 %v1389_v20, %v1389_v20 }
 0x2fe   :  { %785 = vmatmul.mubr.bf16.vlgmr.msra.gmra.mrb[8].mxu1 %v644_v21 }
 0x3d1   :  { %v786_v33 = vpop.f32.mrb[8].mxu1 }
 0x3d2   :  { %v787_v34 = vadd.f32 %v786_v33, %v665_v31  ;;  %v788_v35 = vpop.f32.mrb[9].mxu1 }
 0x3d3   :  { %v789_v36 = vadd.f32 %v788_v35, %v669_v32  ;;  %v790_v37 = vpop.f32.mrb[10].mxu1 }
 0x3d4   :  { %1390 = vtanh.f32 %v787_v34  ;;  %v791_v38 = vpop.f32.mrb[11].mxu1 }
 0x3d5   :  { %1392 = vtanh.f32 %v789_v36 }
 0x3de   :  { %v1391_v39 = vpop.eup %1390 }
 0x3df   :  { %v1393_v40 = vpop.eup %1392  ;;  %v795_v42 = vpack.c.bf16 %v1391_v39, %v1391_v39 }
 0x3e0   :  { %v796_v41 = vpack.c.bf16 %v1393_v40, %v1393_v40 }
 0x3e2   :  { %1032 = vmatprep.mubr.bf16.mxu0 %v796_v41 }
 0x3e3   :  { %1033 = vmatmul.mubr.bf16.vlgmr.msra.gmra.mrb[4].mxu0 %v795_v42 }
 0x3e4   :  { %1453 = shalt.err (!%p1450_p6)
}
 0x3e5   :  { %s1454_s26 = scalar_lea.hbm %s1872_s7, 128 }
 0x3e6   :  { %p1455_p7 = scmp.ne.s32.totalorder %s1872_s7, %s1454_s26  ;;  %p1458_p8 = scmp.lt.u32.totalorder %s1454_s26, %s1872_s7 }
 0x3e8   :  { %p1460_p9 = pnand %p1458_p8, %p1455_p7 }
 0x3ea   :  { %1463 = shalt.err (!%p1460_p9)
}
 0x3eb   :  { %1060 = dma.vmem_to_hbm [thread:$0]  %s1058_s22, 128, %s1872_s7, [#allocation4]   ;;  %v67_v43 = vld [vmem:[%s1871_s6 + $0x7] sm:$0x3] }
 0x3ec   :  { %v833_v44 = vrot.slane %v67_v43, %v1723_v57  ;;  %v837_v45 = vrot.slane %v67_v43, %v1717_v53  ;;  %s1502_s7 = smov [#allocation8]  }
 0x3ed   :  { %s1067_s9 = sshll.u32 %s1502_s7, 4  ;;  %s1068_s9 = int_to_ptr.vmem [resolvable:$true] %s1067_s9 }
 0x3ee   :  { %s1464_s6 = scalar_lea.vmem %s1068_s9, 256  ;;  %p1469_p11 = scmp.lt.s32.totalorder %s1068_s9, %s1068_s9 }
 0x3ef   :  { %p1465_p10 = scmp.ne.s32.totalorder %s1068_s9, %s1464_s6  ;;  %p1470_p12 = scmp.lt.s32.totalorder %s1464_s6, %s1464_s6 }
 0x3f1   :  { %p1471_p13 = por %p1470_p12, %p1469_p11 }
 0x3f3   :  { %p1472_p0 = pnand %p1471_p13, %p1465_p10 }
 0x4b6   :  { %v1034_v46 = vpop.f32.mrb[4].mxu0 }
 0x4b7   :  { %v1035_v47 = vadd.f32 %v1034_v46, %v833_v44  ;;  %v1036_v48 = vpop.f32.mrb[5].mxu0 }
 0x4b8   :  { %v1037_v49 = vadd.f32 %v1036_v48, %v837_v45  ;;  %v1038_v50 = vpop.f32.mrb[6].mxu0 }
 0x4b9   :  { %v1041_v51 = vmul.f32 0.5, %v1035_v47  ;;  %v1039_v52 = vpop.f32.mrb[7].mxu0 }
 0x4ba   :  { %v1042_v54 = vmul.f32 0.5, %v1037_v49 }
 0x4bb   :  { %1394 = vtanh.f32 %v1041_v51 }
 0x4bc   :  { %1396 = vtanh.f32 %v1042_v54 }
 0x4c5   :  { %v1395_v55 = vpop.eup %1394 }
 0x4c6   :  { %v1397_v56 = vpop.eup %1396  ;;  %v1045_v58 = vmul.f32 0.5, %v1395_v55 }
 0x4c7   :  { %v1046_v59 = vmul.f32 0.5, %v1397_v56 }
 0x4c8   :  { %v1047_v60 = vadd.f32 0.5, %v1045_v58 }
 0x4c9   :  { %v1048_v57 = vadd.f32 0.5, %v1046_v59 }
 0x4ca   :  { %1049 = vst [vmem:[#allocation8] sm:$0xff] %v1047_v60 }
 0x4cb   :  { %1050 = vst.msk [vmem:[#allocation8 + $0x8] sm:$0xff] %vm187_vm0, %v1048_v57 }
 0x4cc   :  { %1475 = shalt.err (!%p1472_p0)
}
 0x4cd   :  { %s1476_s12 = scalar_lea.hbm %s1873_s8, 256 }
 0x4ce   :  { %p1477_p1 = scmp.ne.s32.totalorder %s1873_s8, %s1476_s12  ;;  %p1480_p2 = scmp.lt.u32.totalorder %s1476_s12, %s1873_s8 }
 0x4d0   :  { %p1482_p3 = pnand %p1480_p2, %p1477_p1 }
 0x4d2   :  { %1485 = shalt.err (!%p1482_p3)
}
 0x4d3   :  { %1070 = dma.vmem_to_hbm [thread:$0]  %s1068_s9, 256, %s1873_s8, [#allocation9]  }
 0x4d4   :  { %1490 = dma.done.wait [#allocation4], 128  }
 0x4d5   :  { %1491 = vsyncadd [#allocation4], 4294967168 }
 0x4d6   :  { %1492 = dma.done.wait [#allocation9], 256  }
 0x4d7   :  { %1493 = vsyncadd [#allocation9], 4294967040 }
 0x4d8   :  { %1077 = vsyncpa [#allocation3], 1 }
 0x4d9   :  { %1078 = vsyncpa [#allocation6], 1 }
 0x4da   :  { %1079 = vsyncpa [#allocation4], 1 }
 0x4db   :  { %1080 = vsyncpa [#allocation9], 1 }

</bundles_post_ra>
